<compile_context>
chip_gen: v7x
topology: tpu7x:2x2x1
jax: 0.10.0
libtpu: 0.0.40
codegen_flags: <defaults>
</compile_context>

<pallas_src>
import jax
import jax.numpy as jnp
from jax.experimental import pallas as pl
from jax.experimental.pallas import tpu as pltpu


def _round_up(n, m):
    return ((n + m - 1) // m) * m


def _sequential_kernel(x_ref, w1_ref, b1_ref, w2_ref, b2_ref, o_ref):
    """Fused forward of Linear -> ReLU -> Linear -> Tanh on one batch tile.

    x_ref:  (TB, D_in)      activations tile (grid over batch)
    w1_ref: (D_in, H)       VMEM-resident (constant index_map)
    b1_ref: (1, H)
    w2_ref: (H, D_out)
    b2_ref: (1, D_out)
    o_ref:  (TB, D_out)
    """
    # --- module 1: Linear(D_in -> H), f32 accumulation on the MXU ---
    h = jnp.dot(x_ref[...], w1_ref[...],
                preferred_element_type=jnp.float32)
    h = h + b1_ref[...].astype(jnp.float32)
    # --- module 2: ReLU (VPU, f32) ---
    h = jnp.maximum(h, 0.0)
    # --- module 3: Linear(H -> D_out) ---
    y = jnp.dot(h.astype(w2_ref.dtype), w2_ref[...],
                preferred_element_type=jnp.float32)
    y = y + b2_ref[...].astype(jnp.float32)
    # --- module 4: Tanh (EUP) ---
    o_ref[...] = jnp.tanh(y).astype(o_ref.dtype)


def sequential_forward(x, w1, b1, w2, b2, *, block_b=4096):
    """Fused Sequential([Linear, ReLU, Linear, Tanh]) forward as one pallas_call.

    No feature padding and no wrapper-side pad/slice passes: block last dims
    equal the full feature dims, the batch axis is tiled by the grid, and the
    weights/biases stay VMEM-resident across all grid steps.
    """
    B, D_in = x.shape
    H = w1.shape[1]
    D_out = w2.shape[1]
    b1 = b1.reshape(1, H)
    b2 = b2.reshape(1, D_out)

    # Batch tile selection.
    if B <= block_b:
        if B >= 1024:
            # Large-ish single-shot batch: split into >=2 grid steps so the
            # "parallel" batch axis can use both TensorCores on v7x.
            tb = _round_up(pl.cdiv(B, 2), 8)
        else:
            # Block dim == full array dim is always legal (no 8-row rounding
            # or padding needed).
            tb = B
    else:
        tb = block_b  # multiple of 8; last partial block handled by Pallas.

    grid = (pl.cdiv(B, tb),)

    act_bytes = x.dtype.itemsize
    w_bytes = w1.dtype.itemsize
    flops = 2 * B * (D_in * H + H * D_out)
    bytes_accessed = (act_bytes * (B * D_in + B * D_out)
                      + w_bytes * (D_in * H + H + H * D_out + D_out))

    out = pl.pallas_call(
        _sequential_kernel,
        out_shape=jax.ShapeDtypeStruct((B, D_out), x.dtype),
        grid=grid,
        in_specs=[
            # activations: tiled over the batch grid axis, full feature width
            pl.BlockSpec((tb, D_in), lambda i: (i, 0)),
            # weights / biases: constant block index -> VMEM-resident
            pl.BlockSpec((D_in, H), lambda i: (0, 0)),
            pl.BlockSpec((1, H), lambda i: (0, 0)),
            pl.BlockSpec((H, D_out), lambda i: (0, 0)),
            pl.BlockSpec((1, D_out), lambda i: (0, 0)),
        ],
        out_specs=pl.BlockSpec((tb, D_out), lambda i: (i, 0)),
        compiler_params=pltpu.CompilerParams(
            # batch tiles are independent -> shard across TCs on v7x megacore
            dimension_semantics=("parallel",),
        ),
        cost_estimate=pl.CostEstimate(
            flops=flops,
            transcendentals=B * D_out,
            bytes_accessed=bytes_accessed,
        ),
    )(x, w1, b1, w2, b2)

    return out


def _ref_forward(x, w1, b1, w2, b2):
    """Plain-JAX reference of the same module chain (sanity check)."""
    h = jnp.maximum(x @ w1 + b1.reshape(1, -1), 0.0)
    return jnp.tanh(h @ w2 + b2.reshape(1, -1))


if __name__ == "__main__":
    key = jax.random.PRNGKey(0)
    k_x, k_w1, k_b1, k_w2, k_b2 = jax.random.split(key, 5)

    B, D_in, H, D_out = 8, 32, 64, 32

    x = jax.random.normal(k_x, (B, D_in), dtype=jnp.float32)
    # Deterministic parameter init (uniform, like PyTorch's default Linear init).
    w1 = jax.random.uniform(k_w1, (D_in, H), jnp.float32,
                            -1.0 / D_in ** 0.5, 1.0 / D_in ** 0.5)
    b1 = jax.random.uniform(k_b1, (1, H), jnp.float32,
                            -1.0 / D_in ** 0.5, 1.0 / D_in ** 0.5)
    w2 = jax.random.uniform(k_w2, (H, D_out), jnp.float32,
                            -1.0 / H ** 0.5, 1.0 / H ** 0.5)
    b2 = jax.random.uniform(k_b2, (1, D_out), jnp.float32,
                            -1.0 / H ** 0.5, 1.0 / H ** 0.5)

    out = sequential_forward(x, w1, b1, w2, b2)
    out = jax.block_until_ready(out)

    ref = _ref_forward(x, w1, b1, w2, b2)
    assert out.shape == (B, D_out)
    assert jnp.allclose(out, ref, atol=1e-5, rtol=1e-5)

    print("KERNEL_OK")
</pallas_src>

<mosaic_0001>
module attributes {stable_mosaic.version = 11 : i64} {
  func.func @_sequential_kernel(%arg0: i32, %arg1: memref<8x32xf32, #tpu.memory_space<vmem>>, %arg2: memref<32x64xf32, #tpu.memory_space<vmem>>, %arg3: memref<1x64xf32, #tpu.memory_space<vmem>>, %arg4: memref<64x32xf32, #tpu.memory_space<vmem>>, %arg5: memref<1x32xf32, #tpu.memory_space<vmem>>, %arg6: memref<8x32xf32, #tpu.memory_space<vmem>>) attributes {dimension_semantics = [#tpu.dimension_semantics<parallel>], iteration_bounds = array<i64: 1>, scalar_prefetch = 0 : i64, scratch_operands = 0 : i64, tpu.core_type = #tpu.core_type<tc>, window_params = [{transform_indices = @transform_0, window_bounds = array<i64: 8, 32>}, {pipeline_mode = #tpu.pipeline_mode<synchronous>, transform_indices = @transform_1, window_bounds = array<i64: 32, 64>}, {pipeline_mode = #tpu.pipeline_mode<synchronous>, transform_indices = @transform_2, window_bounds = array<i64: 1, 64>}, {pipeline_mode = #tpu.pipeline_mode<synchronous>, transform_indices = @transform_3, window_bounds = array<i64: 64, 32>}, {pipeline_mode = #tpu.pipeline_mode<synchronous>, transform_indices = @transform_4, window_bounds = array<i64: 1, 32>}, {transform_indices = @transform_5, window_bounds = array<i64: 8, 32>}]} {
    %c0 = arith.constant 0 : index
    %c0_0 = arith.constant 0 : index
    %0 = vector.load %arg1[%c0, %c0_0] : memref<8x32xf32, #tpu.memory_space<vmem>>, vector<8x32xf32>
    %c0_1 = arith.constant 0 : index
    %c0_2 = arith.constant 0 : index
    %1 = vector.load %arg2[%c0_1, %c0_2] : memref<32x64xf32, #tpu.memory_space<vmem>>, vector<32x64xf32>
    %cst = arith.constant dense<0.000000e+00> : vector<8x64xf32>
    %2 = tpu.matmul %0, %1, %cst {dimension_numbers = #tpu.dot_dimension_numbers<[1], [0], [0], [1], [0, 0, 1, 1], [], []>} : vector<8x32xf32>, vector<32x64xf32>, vector<8x64xf32> -> vector<8x64xf32>
    %c0_3 = arith.constant 0 : index
    %c0_4 = arith.constant 0 : index
    %3 = vector.load %arg3[%c0_3, %c0_4] : memref<1x64xf32, #tpu.memory_space<vmem>>, vector<1x64xf32>
    %4 = vector.broadcast %3 : vector<1x64xf32> to vector<8x64xf32>
    %5 = arith.addf %2, %4 : vector<8x64xf32>
    %cst_5 = arith.constant 0.000000e+00 : f32
    %6 = vector.broadcast %cst_5 : f32 to vector<8x64xf32>
    %7 = arith.maximumf %5, %6 : vector<8x64xf32>
    %c0_6 = arith.constant 0 : index
    %c0_7 = arith.constant 0 : index
    %8 = vector.load %arg4[%c0_6, %c0_7] : memref<64x32xf32, #tpu.memory_space<vmem>>, vector<64x32xf32>
    %cst_8 = arith.constant dense<0.000000e+00> : vector<8x32xf32>
    %9 = tpu.matmul %7, %8, %cst_8 {dimension_numbers = #tpu.dot_dimension_numbers<[1], [0], [0], [1], [0, 0, 1, 1], [], []>} : vector<8x64xf32>, vector<64x32xf32>, vector<8x32xf32> -> vector<8x32xf32>
    %c0_9 = arith.constant 0 : index
    %c0_10 = arith.constant 0 : index
    %10 = vector.load %arg5[%c0_9, %c0_10] : memref<1x32xf32, #tpu.memory_space<vmem>>, vector<1x32xf32>
    %11 = vector.broadcast %10 : vector<1x32xf32> to vector<8x32xf32>
    %12 = arith.addf %9, %11 : vector<8x32xf32>
    %13 = math.tanh %12 : vector<8x32xf32>
    %c0_11 = arith.constant 0 : index
    %c0_12 = arith.constant 0 : index
    %14 = vector.load %arg6[%c0_11, %c0_12] : memref<8x32xf32, #tpu.memory_space<vmem>>, vector<8x32xf32>
    tpu.vector_store %arg6[%c0_11, %c0_12], %13 {strides = array<i32>} : memref<8x32xf32, #tpu.memory_space<vmem>>, vector<8x32xf32>,
    return
  }
  func.func @transform_0(%arg0: i32) -> (i32, i32) {
    %c0_i32 = arith.constant 0 : i32
    %c0_i32_0 = arith.constant 0 : i32
    return %arg0, %c0_i32 : i32, i32
  }
  func.func @transform_1(%arg0: i32) -> (i32, i32) {
    %c0_i32 = arith.constant 0 : i32
    %c0_i32_0 = arith.constant 0 : i32
    %c0_i32_1 = arith.constant 0 : i32
    return %c0_i32, %c0_i32_0 : i32, i32
  }
  func.func @transform_2(%arg0: i32) -> (i32, i32) {
    %c0_i32 = arith.constant 0 : i32
    %c0_i32_0 = arith.constant 0 : i32
    %c0_i32_1 = arith.constant 0 : i32
    return %c0_i32, %c0_i32_0 : i32, i32
  }
  func.func @transform_3(%arg0: i32) -> (i32, i32) {
    %c0_i32 = arith.constant 0 : i32
    %c0_i32_0 = arith.constant 0 : i32
    %c0_i32_1 = arith.constant 0 : i32
    return %c0_i32, %c0_i32_0 : i32, i32
  }
  func.func @transform_4(%arg0: i32) -> (i32, i32) {
    %c0_i32 = arith.constant 0 : i32
    %c0_i32_0 = arith.constant 0 : i32
    %c0_i32_1 = arith.constant 0 : i32
    return %c0_i32, %c0_i32_0 : i32, i32
  }
  func.func @transform_5(%arg0: i32) -> (i32, i32) {
    %c0_i32 = arith.constant 0 : i32
    %c0_i32_0 = arith.constant 0 : i32
    return %arg0, %c0_i32 : i32, i32
  }
}

</mosaic_0001>

<bundles_post_ra>
// kernel: tpu_custom_call.1
= control target key start
LH: loop header
LB: loop body
LE: loop exit
PB: predicated region body
PF: predicated region fallthrough
CT: control target
= control target key end

     0   :  { %v309_v3 = vmov 0.0|0.0   ;;  %vm310_vm0 = vmmov 0   ;;  %v311_v6 = vmov 0.0   ;;  %s402_s0 = inlined_call_operand.vmem [shape: f32[8,32], index: 0, kind: input, shape index: {}]   ;;  %s403_s1 = inlined_call_operand.vmem [shape: f32[32,64], index: 1, kind: input, shape index: {}]   ;;  %s404_s2 = inlined_call_operand.vmem [shape: f32[1,64], index: 2, kind: input, shape index: {}]   ;;  %s405_s3 = inlined_call_operand.vmem [shape: f32[64,32], index: 3, kind: input, shape index: {}]   ;;  %s406_s4 = inlined_call_operand.vmem [shape: f32[1,32], index: 4, kind: input, shape index: {}]   ;;  %s407_s5 = inlined_call_operand.hbm [shape: f32[8,32], index: 5, kind: output, shape index: {}]  }
   0x1   :  { %v22_v0 = vld [vmem:[%s403_s1] sm:$0xff]  ;;  %v23_v1 = vld [vmem:[%s403_s1 + $0x8] sm:$0xff]  ;;  %v24_v2 = vld [vmem:[%s403_s1 + $0x10] sm:$0xff]  ;;  %261 = vmatprep.subr.bf16.mxu0 %v309_v3  ;;  %239 = vmatprep.mubr.msk.f32.mxu0 %vm310_vm0, %v311_v6 }
   0x2   :  { %v262_v4 = vpack.c.bf16 %v23_v1, %v22_v0  ;;  %v25_v5 = vld [vmem:[%s403_s1 + $0x18] sm:$0xff]  ;;  %v108_v7 = vld [vmem:[%s405_s3] sm:$0xff]  ;;  %267 = vmatprep.subr.bf16.mxu1 %v309_v3  ;;  %v109_v8 = vld [vmem:[%s405_s3 + $0x8] sm:$0xff]  ;;  %258 = vmatprep.mubr.msk.f32.mxu1 %vm310_vm0, %v311_v6 }
   0x3   :  { %v110_v9 = vld [vmem:[%s405_s3 + $0x10] sm:$0xff]  ;;  %v111_v10 = vld [vmem:[%s405_s3 + $0x18] sm:$0xff]  ;;  %v265_v11 = vpack.c.bf16 %v25_v5, %v24_v2  ;;  %v268_v12 = vpack.c.bf16 %v109_v8, %v108_v7 }
   0x4   :  { %263 = vmatpush3.bf16.msra.mxu0 %v262_v4 }
   0x5   :  { %264 = vmatprep.subr.bf16.mxu0 %v309_v3 }
   0x6   :  { %10 = vsyncpa [#allocation3], 0  ;;  %269 = vmatpush3.bf16.msra.mxu1 %v268_v12  ;;  %v271_v13 = vpack.c.bf16 %v111_v10, %v110_v9  ;;  %v112_v14 = vld [vmem:[%s405_s3 + $0x20] sm:$0xff]  ;;  %v113_v15 = vld [vmem:[%s405_s3 + $0x28] sm:$0xff]  ;;  %vm33_vm1 = vcmask 261120   ;;  %vm123_vm2 = vcmask 523264  }
   0x7   :  { %270 = vmatprep.subr.bf16.mxu1 %v309_v3  ;;  %v21_v16 = vld [vmem:[%s402_s0] sm:$0xff]  ;;  %v274_v17 = vpack.c.bf16 %v113_v15, %v112_v14  ;;  %v114_v18 = vld [vmem:[%s405_s3 + $0x30] sm:$0xff]  ;;  %v115_v19 = vld [vmem:[%s405_s3 + $0x38] sm:$0xff]  ;;  %s312_s3 = smov [#allocation2]  }
   0x8   :  { %266 = vmatpush3.bf16.msra.mxu0 %v265_v11  ;;  %v277_v20 = vpack.c.bf16 %v115_v19, %v114_v18  ;;  %v213_v21 = vld [vmem:[%s404_s2] ss:$0 sm:$0xff]  ;;  %s205_s21 = sshll.u32 %s312_s3, 4  ;;  %s206_s21 = int_to_ptr.vmem [resolvable:$true] %s205_s21 }
   0x9   :  { %v215_v26 = vld [vmem:[%s406_s4] ss:$0 sm:$0xff]  ;;  %s285_s2 = scalar_lea.vmem %s206_s21, 128  ;;  %p290_p1 = scmp.lt.s32.totalorder %s206_s21, %s206_s21 }
   0xa   :  { %272 = vmatpush3.bf16.msra.mxu1 %v271_v13  ;;  %p286_p0 = scmp.ne.s32.totalorder %s206_s21, %s285_s2  ;;  %p291_p2 = scmp.lt.s32.totalorder %s285_s2, %s285_s2 }
   0xb   :  { %240 = vmatmul.mubr.msk.f32.vlgmr.msra.gmra.mrb[0].mxu0 %vm33_vm1, %v21_v16  ;;  %273 = vmatprep.subr.bf16.mxu1 %v309_v3 }
   0xc   :  { %p292_p3 = por %p291_p2, %p290_p1 }
   0xe   :  { %275 = vmatpush3.bf16.msra.mxu1 %v274_v17  ;;  %p293_p4 = pnand %p292_p3, %p286_p0 }
   0xf   :  { %276 = vmatprep.subr.bf16.mxu1 %v309_v3 }
  0x12   :  { %278 = vmatpush3.bf16.msra.mxu1 %v277_v20 }
  0xde   :  { %v103_v22 = vpop.f32.mrb[0].mxu0 }
  0xdf   :  { %v104_v23 = vadd.f32 %v213_v21, %v103_v22  ;;  %v241_v24 = vpop.f32.mrb[1].mxu0 }
  0xe1   :  { %v107_v25 = vmax.f32 %v104_v23, 0.0 }
  0xe3   :  { %259 = vmatmul.mubr.msk.f32.vlgmr.msra.gmra.mrb[0].mxu1 %vm123_vm2, %v107_v25 }
 0x1b6   :  { %v193_v27 = vpop.f32.mrb[0].mxu1 }
 0x1b7   :  { %v194_v28 = vadd.f32 %v215_v26, %v193_v27  ;;  %v260_v29 = vpop.f32.mrb[1].mxu1 }
 0x1b9   :  { %283 = vtanh.f32 %v194_v28 }
 0x1c3   :  { %v284_v30 = vpop.eup %283 }
 0x1c4   :  { %198 = vst.msk [vmem:[#allocation2] sm:$0xff] %vm33_vm1, %v284_v30 }
 0x1c5   :  { %296 = shalt.err (!%p293_p4)
}
 0x1c6   :  { %s297_s4 = scalar_lea.hbm %s407_s5, 128 }
 0x1c7   :  { %p298_p5 = scmp.ne.s32.totalorder %s407_s5, %s297_s4  ;;  %p301_p6 = scmp.lt.u32.totalorder %s297_s4, %s407_s5 }
 0x1c9   :  { %p303_p7 = pnand %p301_p6, %p298_p5 }
 0x1cb   :  { %306 = shalt.err (!%p303_p7)
}
 0x1cc   :  { %208 = dma.vmem_to_hbm [thread:$0]  %s206_s21, 128, %s407_s5, [#allocation3]  }
 0x1cd   :  { %307 = dma.done.wait [#allocation3], 128  }
 0x1ce   :  { %308 = vsyncadd [#allocation3], 4294967168 }
 0x1cf   :  { %212 = vsyncpa [#allocation3], 1 }

</bundles_post_ra>
